<compile_context>
chip_gen: v7x
topology: tpu7x:2x2x1
jax: 0.10.0
libtpu: 0.0.40
codegen_flags: <defaults>
</compile_context>

<pallas_src>
import functools

import jax
import jax.numpy as jnp
from jax.experimental import pallas as pl
from jax.experimental.pallas import tpu as pltpu


# ------------------------------ tiling helpers -------------------------------

def _round_up(n, m):
    return ((n + m - 1) // m) * m


def _pick_tile(n, target, align):
    """Largest divisor of n that is <= target and a multiple of `align`; else n.

    Callers pad the row dim to a multiple of `align` first, so the full-dim
    fallback only triggers for awkward factorizations (still correct)."""
    if n <= target:
        return n
    d = (target // align) * align
    while d >= align:
        if n % d == 0:
            return d
        d -= align
    return n


def _sublane(dtype):
    return 8 if jnp.dtype(dtype).itemsize >= 4 else 16


# ------------------------------ linear kernels --------------------------------

def _matmul_bias_kernel(x_ref, w_ref, b_ref, o_ref, acc_ref):
    @pl.when(pl.program_id(2) == 0)
    def _():
        acc_ref[...] = jnp.zeros_like(acc_ref)

    acc_ref[...] += jnp.dot(x_ref[...], w_ref[...], preferred_element_type=jnp.float32)

    @pl.when(pl.program_id(2) == pl.num_programs(2) - 1)
    def _():
        o_ref[...] = (acc_ref[...] + b_ref[...].astype(jnp.float32)).astype(o_ref.dtype)


def _matmul_nobias_kernel(x_ref, w_ref, o_ref, acc_ref):
    @pl.when(pl.program_id(2) == 0)
    def _():
        acc_ref[...] = jnp.zeros_like(acc_ref)

    acc_ref[...] += jnp.dot(x_ref[...], w_ref[...], preferred_element_type=jnp.float32)

    @pl.when(pl.program_id(2) == pl.num_programs(2) - 1)
    def _():
        o_ref[...] = acc_ref[...].astype(o_ref.dtype)


def linear(x2d, w_io, bias=None, *, tm_target=256, tn_target=256, tk_target=512):
    """x2d: (M, Cin); w_io: (Cin, Cout) pre-transposed weight; bias: (Cout,) or None."""
    M0, Cin = x2d.shape
    Cout = w_io.shape[1]
    sub = _sublane(x2d.dtype)
    M = _round_up(M0, sub)
    if M != M0:
        x2d = jnp.pad(x2d, ((0, M - M0), (0, 0)))

    tm = _pick_tile(M, tm_target, sub)
    tn = _pick_tile(Cout, tn_target, 128)
    tk = _pick_tile(Cin, tk_target, 128)
    grid = (M // tm, Cout // tn, Cin // tk)

    x_spec = pl.BlockSpec((tm, tk), lambda i, j, kk: (i, kk))
    w_spec = pl.BlockSpec((tk, tn), lambda i, j, kk: (kk, j))
    o_spec = pl.BlockSpec((tm, tn), lambda i, j, kk: (i, j))
    scratch = [pltpu.VMEM((tm, tn), jnp.float32)]
    cparams = pltpu.CompilerParams(
        dimension_semantics=("parallel", "parallel", "arbitrary"))
    out_shape = jax.ShapeDtypeStruct((M, Cout), x2d.dtype)

    if bias is not None:
        b_spec = pl.BlockSpec((1, tn), lambda i, j, kk: (0, j))
        out = pl.pallas_call(
            _matmul_bias_kernel,
            grid=grid,
            in_specs=[x_spec, w_spec, b_spec],
            out_specs=o_spec,
            out_shape=out_shape,
            scratch_shapes=scratch,
            compiler_params=cparams,
        )(x2d, w_io, bias.reshape(1, Cout))
    else:
        out = pl.pallas_call(
            _matmul_nobias_kernel,
            grid=grid,
            in_specs=[x_spec, w_spec],
            out_specs=o_spec,
            out_shape=out_shape,
            scratch_shapes=scratch,
            compiler_params=cparams,
        )(x2d, w_io)
    return out[:M0] if M != M0 else out


# --------------------- fused (LayerNorm +) k/v projection ---------------------

def _ln_kv_kernel(x_ref, g_ref, b_ref, wk_ref, wv_ref, k_ref, v_ref, *, eps):
    x = x_ref[...].astype(jnp.float32)
    mu = jnp.mean(x, axis=-1, keepdims=True)
    var = jnp.mean(jnp.square(x - mu), axis=-1, keepdims=True)
    xn = (x - mu) * jax.lax.rsqrt(var + eps) * g_ref[...] + b_ref[...]
    xn = xn.astype(wk_ref.dtype)   # matches MXU input dtype of the weights
    k_ref[...] = jnp.dot(xn, wk_ref[...], preferred_element_type=jnp.float32).astype(k_ref.dtype)
    v_ref[...] = jnp.dot(xn, wv_ref[...], preferred_element_type=jnp.float32).astype(v_ref.dtype)


def _kv_kernel(x_ref, wk_ref, wv_ref, k_ref, v_ref):
    x = x_ref[...]
    k_ref[...] = jnp.dot(x, wk_ref[...], preferred_element_type=jnp.float32).astype(k_ref.dtype)
    v_ref[...] = jnp.dot(x, wv_ref[...], preferred_element_type=jnp.float32).astype(v_ref.dtype)


def kv_project(x2d, k_w, v_w, ln=None, *, tm_target=256, eps=1e-5):
    """x2d: (M, C) -> (k2d, v2d), each (M, C). Optional fused LayerNorm first."""
    M0, C = x2d.shape
    sub = _sublane(x2d.dtype)
    M = _round_up(M0, sub)
    if M != M0:
        x2d = jnp.pad(x2d, ((0, M - M0), (0, 0)))

    tm = _pick_tile(M, tm_target, sub)
    grid = (M // tm,)

    x_spec = pl.BlockSpec((tm, C), lambda i: (i, 0))
    w_spec = pl.BlockSpec((C, C), lambda i: (0, 0))
    o_spec = pl.BlockSpec((tm, C), lambda i: (i, 0))
    out_shape = (jax.ShapeDtypeStruct((M, C), x2d.dtype),
                 jax.ShapeDtypeStruct((M, C), x2d.dtype))
    cparams = pltpu.CompilerParams(dimension_semantics=("parallel",))

    if ln is not None:
        gamma, beta = ln
        vec_spec = pl.BlockSpec((1, C), lambda i: (0, 0))
        k2d, v2d = pl.pallas_call(
            functools.partial(_ln_kv_kernel, eps=eps),
            grid=grid,
            in_specs=[x_spec, vec_spec, vec_spec, w_spec, w_spec],
            out_specs=(o_spec, o_spec),
            out_shape=out_shape,
            compiler_params=cparams,
        )(x2d, gamma.reshape(1, C), beta.reshape(1, C), k_w, v_w)
    else:
        k2d, v2d = pl.pallas_call(
            _kv_kernel,
            grid=grid,
            in_specs=[x_spec, w_spec, w_spec],
            out_specs=(o_spec, o_spec),
            out_shape=out_shape,
            compiler_params=cparams,
        )(x2d, k_w, v_w)
    if M != M0:
        k2d, v2d = k2d[:M0], v2d[:M0]
    return k2d, v2d


# -------- fused attention: q-proj + flash softmax (batched heads) + out-proj ---

def _attn_kernel(x_ref, k_ref, v_ref, qw_ref, pw_ref, pb_ref, o_ref,
                 qh_sc, m_sc, l_sc, acc_sc, *, nh, hd, kv_len, masked):
    ki = pl.program_id(2)
    tq = x_ref.shape[1]
    tk = k_ref.shape[1]
    C = nh * hd

    @pl.when(ki == 0)
    def _():
        m_sc[...] = jnp.full_like(m_sc, -jnp.inf)
        l_sc[...] = jnp.zeros_like(l_sc)
        acc_sc[...] = jnp.zeros_like(acc_sc)
        # q projection (scale already folded into qw); head-split once per q tile.
        q2d = jnp.dot(x_ref[0], qw_ref[...], preferred_element_type=jnp.float32)
        qh_sc[...] = jnp.transpose(q2d.reshape(tq, nh, hd), (1, 0, 2)).astype(qh_sc.dtype)

    # Head-major views of the lane-dense k/v tiles (single relayout per tile).
    kh = jnp.transpose(k_ref[0].reshape(tk, nh, hd), (1, 0, 2))   # (nh, tk, hd)
    vh = jnp.transpose(v_ref[0].reshape(tk, nh, hd), (1, 0, 2))   # (nh, tk, hd)
    qh = qh_sc[...]                                               # (nh, tq, hd)

    # All heads in one batched matmul (MXU pipeline stays full).
    s = jnp.einsum('hqd,hkd->hqk', qh, kh,
                   preferred_element_type=jnp.float32)            # (nh, tq, tk)
    if masked:  # only traced when Nk was padded
        col = jax.lax.broadcasted_iota(jnp.int32, (1, 1, tk), 2) + ki * tk
        s = jnp.where(col < kv_len, s, -jnp.inf)

    m_prev = m_sc[...]                                            # (nh, tq, 1)
    m_new = jnp.maximum(m_prev, jnp.max(s, axis=-1, keepdims=True))
    alpha = jnp.exp(m_prev - m_new)
    p = jnp.exp(s - m_new)
    l_sc[...] = alpha * l_sc[...] + jnp.sum(p, axis=-1, keepdims=True)
    acc_sc[...] = alpha * acc_sc[...] + jnp.einsum(
        'hqk,hkd->hqd', p.astype(vh.dtype), vh, preferred_element_type=jnp.float32)
    m_sc[...] = m_new

    @pl.when(ki == pl.num_programs(2) - 1)
    def _():
        # Deferred normalization (once per q tile; exact divide keeps 1e-4 tol),
        # merge heads back to lane-dense (tq, C) and fuse the output projection.
        acc = acc_sc[...] / l_sc[...]                             # (nh, tq, hd)
        o2d = jnp.transpose(acc, (1, 0, 2)).reshape(tq, C).astype(pw_ref.dtype)
        out = jnp.dot(o2d, pw_ref[...], preferred_element_type=jnp.float32)
        out = out + pb_ref[...].astype(jnp.float32)
        o_ref[0] = out.astype(o_ref.dtype)


def attention_fused(x, k, v, q_w_scaled, proj_w, proj_b, num_heads,
                    *, tq_target=256, vmem_budget=10 * 1024 * 1024):
    """x: (B, N, C); k, v: (B, Nk, C) -> module output (B, N, C)."""
    B, N, C = x.shape
    Nk = k.shape[1]
    nh = num_heads
    hd = C // nh
    itemsize = jnp.dtype(x.dtype).itemsize
    sub = _sublane(x.dtype)

    # Pad sequence dims to a sublane multiple (padded keys masked in-kernel,
    # padded query rows sliced off below).
    Np, Nkp = _round_up(N, sub), _round_up(Nk, sub)
    if Np != N:
        x = jnp.pad(x, ((0, 0), (0, Np - N), (0, 0)))
    if Nkp != Nk:
        k = jnp.pad(k, ((0, 0), (0, Nkp - Nk), (0, 0)))
        v = jnp.pad(v, ((0, 0), (0, Nkp - Nk), (0, 0)))

    def est_bytes(tq_, tk_):
        c_pad = _round_up(C, 128)
        hd_pad = _round_up(hd, 128)
        io = 2 * itemsize * (2 * tq_ * c_pad + 2 * tk_ * c_pad)      # x,out + k,v (dbl-buf)
        wt = 2 * itemsize * (2 * C * c_pad + c_pad)                  # q_w, proj_w, proj_b
        sc = 4 * nh * tq_ * (2 * 128 + hd_pad) + itemsize * nh * tq_ * hd_pad
        return io + wt + sc

    tq = _pick_tile(Np, tq_target, sub)
    tk = Nkp                                   # try fully VMEM-resident K/V
    if est_bytes(tq, tk) > vmem_budget:
        tk = _pick_tile(Nkp, 512, sub)
    if est_bytes(tq, tk) > vmem_budget:
        tq = _pick_tile(Np, 128, sub)

    grid = (B, Np // tq, Nkp // tk)
    kernel = functools.partial(_attn_kernel, nh=nh, hd=hd,
                               kv_len=Nk, masked=(Nkp != Nk))

    out = pl.pallas_call(
        kernel,
        grid=grid,
        in_specs=[
            pl.BlockSpec((1, tq, C), lambda b, qi, ki: (b, qi, 0)),   # x
            pl.BlockSpec((1, tk, C), lambda b, qi, ki: (b, ki, 0)),   # k (resident across qi when tk == Nk)
            pl.BlockSpec((1, tk, C), lambda b, qi, ki: (b, ki, 0)),   # v
            pl.BlockSpec((C, C), lambda b, qi, ki: (0, 0)),           # q_w (pre-scaled)
            pl.BlockSpec((C, C), lambda b, qi, ki: (0, 0)),           # proj_w
            pl.BlockSpec((1, C), lambda b, qi, ki: (0, 0)),           # proj_b
        ],
        out_specs=pl.BlockSpec((1, tq, C), lambda b, qi, ki: (b, qi, 0)),
        out_shape=jax.ShapeDtypeStruct((B, Np, C), x.dtype),
        scratch_shapes=[
            pltpu.VMEM((nh, tq, hd), x.dtype),      # head-split q (written at ki==0)
            pltpu.VMEM((nh, tq, 1), jnp.float32),   # running max m
            pltpu.VMEM((nh, tq, 1), jnp.float32),   # running sum l
            pltpu.VMEM((nh, tq, hd), jnp.float32),  # output accumulator
        ],
        compiler_params=pltpu.CompilerParams(
            dimension_semantics=("parallel", "parallel", "arbitrary"),
            vmem_limit_bytes=48 * 1024 * 1024),
    )(x, k, v, q_w_scaled, proj_w, proj_b.reshape(1, C))

    return out[:, :N, :] if Np != N else out


# ------------------------------ module wrapper ---------------------------------

def init_params(key, dim, num_heads, sr_ratio, dtype=jnp.float32):
    ks = jax.random.split(key, 7)
    s = 0.02
    scale = (dim // num_heads) ** (-0.5)
    q_w = jax.random.normal(ks[0], (dim, dim), dtype) * s
    # All Linear weights stored pre-transposed as (Cin, Cout) -> no .T per call.
    # k_w / v_w are the two halves of the torch kv Linear weight; the softmax
    # scale is folded into q_w once at init ("q_w_scaled").
    params = {
        "q_w": q_w,
        "q_w_scaled": (q_w * scale).astype(dtype),
        "k_w": jax.random.normal(ks[1], (dim, dim), dtype) * s,
        "v_w": jax.random.normal(ks[2], (dim, dim), dtype) * s,
        "proj_w": jax.random.normal(ks[3], (dim, dim), dtype) * s,
        "proj_b": jax.random.normal(ks[4], (dim,), dtype) * s,
    }
    if sr_ratio > 1:
        w_oihw = jax.random.normal(ks[5], (dim, dim, sr_ratio, sr_ratio), dtype) * s
        params["sr_w_oihw"] = w_oihw                                      # reference conv
        params["sr_w"] = w_oihw.reshape(dim, dim * sr_ratio * sr_ratio).T  # (Cin*k*k, Cout)
        params["sr_b"] = jax.random.normal(ks[6], (dim,), dtype) * s
        params["ln_g"] = jnp.ones((dim,), dtype)
        params["ln_b"] = jnp.zeros((dim,), dtype)
    return params


def attention_forward(params, x, H, W, num_heads, sr_ratio):
    B, N, C = x.shape

    if sr_ratio > 1:
        s = sr_ratio
        # Conv2d(k=s, stride=s) as a patch matmul; patch flattened (ci, kh, kw).
        # TODO(synk): fold this space-to-depth relayout into the sr linear kernel
        # via a (B, H/s, s, W/s, s, C) BlockSpec to save one B*N*C HBM round trip.
        xs = x.reshape(B, H // s, s, W // s, s, C)
        xs = xs.transpose(0, 1, 3, 5, 2, 4).reshape(B * (H // s) * (W // s), C * s * s)
        x_ = linear(xs, params["sr_w"], params["sr_b"])                  # (B*Nk, C)
        Nk = (H // s) * (W // s)
        k2d, v2d = kv_project(x_, params["k_w"], params["v_w"],
                              ln=(params["ln_g"], params["ln_b"]))       # fused LN + kv
    else:
        Nk = N
        k2d, v2d = kv_project(x.reshape(B * N, C), params["k_w"], params["v_w"])

    k = k2d.reshape(B, Nk, C)
    v = v2d.reshape(B, Nk, C)

    # Fused q-proj + flash attention + output projection (single kernel).
    return attention_fused(x, k, v, params["q_w_scaled"],
                           params["proj_w"], params["proj_b"], num_heads)


# ------------------------------ pure-JAX reference -----------------------------

def reference_forward(params, x, H, W, num_heads, sr_ratio):
    B, N, C = x.shape
    hd = C // num_heads
    scale = hd ** (-0.5)
    q = (x @ params["q_w"]).reshape(B, N, num_heads, hd).transpose(0, 2, 1, 3)
    if sr_ratio > 1:
        s = sr_ratio
        x_nchw = x.transpose(0, 2, 1).reshape(B, C, H, W)
        y = jax.lax.conv_general_dilated(
            x_nchw, params["sr_w_oihw"], (s, s), "VALID",
            dimension_numbers=("NCHW", "OIHW", "NCHW"))
        y = y + params["sr_b"].reshape(1, C, 1, 1)
        x_ = y.reshape(B, C, -1).transpose(0, 2, 1)
        mu = x_.mean(-1, keepdims=True)
        var = ((x_ - mu) ** 2).mean(-1, keepdims=True)
        x_ = (x_ - mu) / jnp.sqrt(var + 1e-5) * params["ln_g"] + params["ln_b"]
    else:
        x_ = x
    Nk = x_.shape[1]
    k = (x_ @ params["k_w"]).reshape(B, Nk, num_heads, hd).transpose(0, 2, 1, 3)
    v = (x_ @ params["v_w"]).reshape(B, Nk, num_heads, hd).transpose(0, 2, 1, 3)
    attn = (q @ k.transpose(0, 1, 3, 2)) * scale
    attn = jax.nn.softmax(attn, axis=-1)
    o = (attn @ v).transpose(0, 2, 1, 3).reshape(B, N, C)
    return o @ params["proj_w"] + params["proj_b"]


# ------------------------------------ main --------------------------------------

if __name__ == "__main__":
    key = jax.random.PRNGKey(0)

    # (B, dim, num_heads, sr_ratio, H, W): exercise both the sr>1 and sr==1 paths.
    configs = [(2, 32, 4, 2, 8, 8), (2, 32, 4, 1, 8, 8)]
    for (B, dim, num_heads, sr_ratio, H, W) in configs:
        N = H * W
        kx, kp, key = jax.random.split(key, 3)
        x = jax.random.normal(kx, (B, N, dim), jnp.float32)
        params = init_params(kp, dim, num_heads, sr_ratio)

        out = jax.block_until_ready(attention_forward(params, x, H, W, num_heads, sr_ratio))
        ref = reference_forward(params, x, H, W, num_heads, sr_ratio)

        assert out.shape == (B, N, dim)
        assert bool(jnp.allclose(out, ref, atol=1e-4, rtol=1e-4)), \
            f"mismatch vs reference (sr_ratio={sr_ratio})"

    print("KERNEL_OK")
</pallas_src>

<mosaic_0001>
module attributes {stable_mosaic.version = 11 : i64} {
  func.func @_matmul_bias_kernel(%arg0: i32, %arg1: i32, %arg2: i32, %arg3: memref<32x128xf32, #tpu.memory_space<vmem>>, %arg4: memref<128x32xf32, #tpu.memory_space<vmem>>, %arg5: memref<1x32xf32, #tpu.memory_space<vmem>>, %arg6: memref<32x32xf32, #tpu.memory_space<vmem>>, %arg7: memref<32x32xf32, #tpu.memory_space<vmem>>) attributes {dimension_semantics = [#tpu.dimension_semantics<parallel>, #tpu.dimension_semantics<parallel>, #tpu.dimension_semantics<arbitrary>], iteration_bounds = array<i64: 1, 1, 1>, scalar_prefetch = 0 : i64, scratch_operands = 1 : i64, tpu.core_type = #tpu.core_type<tc>, window_params = [{transform_indices = @transform_0, window_bounds = array<i64: 32, 128>}, {transform_indices = @transform_1, window_bounds = array<i64: 128, 32>}, {transform_indices = @transform_2, window_bounds = array<i64: 1, 32>}, {transform_indices = @transform_3, window_bounds = array<i64: 32, 32>}]} {
    %c0_i32 = arith.constant 0 : i32
    %0 = arith.cmpi eq, %arg2, %c0_i32 : i32
    %1 = arith.extui %0 : i1 to i32
    %c0_i32_0 = arith.constant 0 : i32
    %2 = arith.cmpi ne, %1, %c0_i32_0 : i32
    scf.if %2 {
      %cst_10 = arith.constant 0.000000e+00 : f32
      %12 = vector.broadcast %cst_10 : f32 to vector<32x32xf32>
      %c0_11 = arith.constant 0 : index
      %c0_12 = arith.constant 0 : index
      %13 = vector.load %arg7[%c0_11, %c0_12] : memref<32x32xf32, #tpu.memory_space<vmem>>, vector<32x32xf32>
      tpu.vector_store %arg7[%c0_11, %c0_12], %12 {strides = array<i32>} : memref<32x32xf32, #tpu.memory_space<vmem>>, vector<32x32xf32>,
    } else {
    }
    %c0 = arith.constant 0 : index
    %c0_1 = arith.constant 0 : index
    %3 = vector.load %arg7[%c0, %c0_1] : memref<32x32xf32, #tpu.memory_space<vmem>>, vector<32x32xf32>
    %c0_2 = arith.constant 0 : index
    %c0_3 = arith.constant 0 : index
    %4 = vector.load %arg3[%c0_2, %c0_3] : memref<32x128xf32, #tpu.memory_space<vmem>>, vector<32x128xf32>
    %c0_4 = arith.constant 0 : index
    %c0_5 = arith.constant 0 : index
    %5 = vector.load %arg4[%c0_4, %c0_5] : memref<128x32xf32, #tpu.memory_space<vmem>>, vector<128x32xf32>
    %cst = arith.constant dense<0.000000e+00> : vector<32x32xf32>
    %6 = tpu.matmul %4, %5, %cst {dimension_numbers = #tpu.dot_dimension_numbers<[1], [0], [0], [1], [0, 0, 1, 1], [], []>} : vector<32x128xf32>, vector<128x32xf32>, vector<32x32xf32> -> vector<32x32xf32>
    %7 = arith.addf %3, %6 : vector<32x32xf32>
    %c0_6 = arith.constant 0 : index
    %c0_7 = arith.constant 0 : index
    %8 = vector.load %arg7[%c0_6, %c0_7] : memref<32x32xf32, #tpu.memory_space<vmem>>, vector<32x32xf32>
    tpu.vector_store %arg7[%c0_6, %c0_7], %7 {strides = array<i32>} : memref<32x32xf32, #tpu.memory_space<vmem>>, vector<32x32xf32>,
    %c0_i32_8 = arith.constant 0 : i32
    %9 = arith.cmpi eq, %arg2, %c0_i32_8 : i32
    %10 = arith.extui %9 : i1 to i32
    %c0_i32_9 = arith.constant 0 : i32
    %11 = arith.cmpi ne, %10, %c0_i32_9 : i32
    scf.if %11 {
      %c0_10 = arith.constant 0 : index
      %c0_11 = arith.constant 0 : index
      %12 = vector.load %arg7[%c0_10, %c0_11] : memref<32x32xf32, #tpu.memory_space<vmem>>, vector<32x32xf32>
      %c0_12 = arith.constant 0 : index
      %c0_13 = arith.constant 0 : index
      %13 = vector.load %arg5[%c0_12, %c0_13] : memref<1x32xf32, #tpu.memory_space<vmem>>, vector<1x32xf32>
      %14 = vector.broadcast %13 : vector<1x32xf32> to vector<32x32xf32>
      %15 = arith.addf %12, %14 : vector<32x32xf32>
      %c0_14 = arith.constant 0 : index
      %c0_15 = arith.constant 0 : index
      %16 = vector.load %arg6[%c0_14, %c0_15] : memref<32x32xf32, #tpu.memory_space<vmem>>, vector<32x32xf32>
      tpu.vector_store %arg6[%c0_14, %c0_15], %15 {strides = array<i32>} : memref<32x32xf32, #tpu.memory_space<vmem>>, vector<32x32xf32>,
    } else {
    }
    return
  }
  func.func @transform_0(%arg0: i32, %arg1: i32, %arg2: i32) -> (i32, i32) {
    %c0_i32 = arith.constant 0 : i32
    return %arg0, %arg2 : i32, i32
  }
  func.func @transform_1(%arg0: i32, %arg1: i32, %arg2: i32) -> (i32, i32) {
    %c0_i32 = arith.constant 0 : i32
    return %arg2, %arg1 : i32, i32
  }
  func.func @transform_2(%arg0: i32, %arg1: i32, %arg2: i32) -> (i32, i32) {
    %c0_i32 = arith.constant 0 : i32
    %c0_i32_0 = arith.constant 0 : i32
    return %c0_i32, %arg1 : i32, i32
  }
  func.func @transform_3(%arg0: i32, %arg1: i32, %arg2: i32) -> (i32, i32) {
    %c0_i32 = arith.constant 0 : i32
    return %arg0, %arg1 : i32, i32
  }
}

</mosaic_0001>

<bundles_post_ra>
// kernel: tpu_custom_call.1
= control target key start
LH: loop header
LB: loop body
LE: loop exit
PB: predicated region body
PF: predicated region fallthrough
CT: control target
= control target key end

     0   :  { %vm19_vm0 = vcmask 261120   ;;  %v315_v5 = vmov 0.0   ;;  %s426_s0 = inlined_call_operand.vmem [shape: f32[32,128], index: 0, kind: input, shape index: {}]   ;;  %s427_s1 = inlined_call_operand.vmem [shape: f32[128,32], index: 1, kind: input, shape index: {}]   ;;  %s428_s2 = inlined_call_operand.vmem [shape: f32[1,32], index: 2, kind: input, shape index: {}]   ;;  %s429_s3 = inlined_call_operand.hbm [shape: f32[32,32], index: 3, kind: output, shape index: {}]  }
   0x1   :  { %v32_v0 = vld [vmem:[%s427_s1] sm:$0xff]  ;;  %v33_v1 = vld [vmem:[%s427_s1 + $0x8] sm:$0xff]  ;;  %v34_v2 = vld [vmem:[%s427_s1 + $0x10] sm:$0xff]  ;;  %21 = vst.msk [vmem:[#allocation2 + $0x8] sm:$0xff] %vm19_vm0, %v315_v5 }
   0x2   :  { %v239_v3 = vpack.c.bf16 %v33_v1, %v32_v0  ;;  %v35_v4 = vld [vmem:[%s427_s1 + $0x18] sm:$0xff]  ;;  %20 = vst.msk [vmem:[#allocation2] sm:$0xff] %vm19_vm0, %v315_v5  ;;  %22 = vst.msk [vmem:[#allocation2 + $0x10] sm:$0xff] %vm19_vm0, %v315_v5  ;;  %v36_v7 = vld [vmem:[%s427_s1 + $0x20] sm:$0xff] }
   0x3   :  { %23 = vst.msk [vmem:[#allocation2 + $0x18] sm:$0xff] %vm19_vm0, %v315_v5  ;;  %v243_v6 = vpack.c.bf16 %v35_v4, %v34_v2  ;;  %v37_v8 = vld [vmem:[%s427_s1 + $0x28] sm:$0xff]  ;;  %v28_v10 = vld [vmem:[%s426_s0] sm:$0xff]  ;;  %v30_v11 = vld [vmem:[%s426_s0 + $0x10] sm:$0xff] }
   0x4   :  { %240 = vmatprep.subr.bf16.mxu0 %v239_v3  ;;  %271 = vmatprep.subr.bf16.mxu1 %v239_v3  ;;  %v247_v9 = vpack.c.bf16 %v37_v8, %v36_v7  ;;  %v38_v12 = vld [vmem:[%s427_s1 + $0x30] sm:$0xff]  ;;  %v39_v13 = vld [vmem:[%s427_s1 + $0x38] sm:$0xff] }
   0x5   :  { %242 = vmatpush3.bf16.msra.mxu0 %v239_v3  ;;  %279 = vmatpush3.bf16.msra.mxu1 %v239_v3 }
   0x6   :  { %244 = vmatprep.subr.bf16.mxu0 %v243_v6  ;;  %272 = vmatprep.subr.bf16.mxu1 %v243_v6 }
   0x7   :  { %233 = vmatprep.mubr.f32.mxu0 %v28_v10  ;;  %236 = vmatprep.mubr.f32.mxu1 %v30_v11 }
   0x8   :  { %8 = vsyncpa [#allocation4], 0  ;;  %v251_v14 = vpack.c.bf16 %v39_v13, %v38_v12  ;;  %v40_v15 = vld [vmem:[%s427_s1 + $0x40] sm:$0xff]  ;;  %v41_v16 = vld [vmem:[%s427_s1 + $0x48] sm:$0xff]  ;;  %s316_s25 = smov [#allocation3]  }
   0x9   :  { %246 = vmatpush3.bf16.msra.mxu0 %v243_v6  ;;  %280 = vmatpush3.bf16.msra.mxu1 %v243_v6  ;;  %v255_v17 = vpack.c.bf16 %v41_v16, %v40_v15  ;;  %v42_v18 = vld [vmem:[%s427_s1 + $0x50] sm:$0xff]  ;;  %v43_v19 = vld [vmem:[%s427_s1 + $0x58] sm:$0xff]  ;;  %v44_v21 = vld [vmem:[%s427_s1 + $0x60] sm:$0xff]  ;;  %s169_s26 = sshll.u32 %s316_s25, 4  ;;  %s170_s26 = int_to_ptr.vmem [resolvable:$true] %s169_s26 }
   0xa   :  { %248 = vmatprep.subr.bf16.mxu0 %v247_v9  ;;  %273 = vmatprep.subr.bf16.mxu1 %v247_v9  ;;  %v259_v20 = vpack.c.bf16 %v43_v19, %v42_v18  ;;  %v45_v22 = vld [vmem:[%s427_s1 + $0x68] sm:$0xff]  ;;  %v46_v24 = vld [vmem:[%s427_s1 + $0x70] sm:$0xff]  ;;  %v47_v25 = vld [vmem:[%s427_s1 + $0x78] sm:$0xff]  ;;  %p296_p1 = scmp.lt.s32.totalorder %s170_s26, %s170_s26 }
   0xb   :  { %v263_v23 = vpack.c.bf16 %v45_v22, %v44_v21  ;;  %v267_v26 = vpack.c.bf16 %v47_v25, %v46_v24  ;;  %v29_v27 = vld [vmem:[%s426_s0 + $0x8] sm:$0xff]  ;;  %v31_v28 = vld [vmem:[%s426_s0 + $0x18] sm:$0xff]  ;;  %v24_v31 = vld [vmem:[#allocation2] sm:$0xff] }
   0xc   :  { %v25_v29 = vld [vmem:[#allocation2 + $0x8] sm:$0xff]  ;;  %v27_v30 = vld [vmem:[#allocation2 + $0x18] sm:$0xff]  ;;  %v26_v32 = vld [vmem:[#allocation2 + $0x10] sm:$0xff] }
   0xd   :  { %250 = vmatpush3.bf16.msra.mxu0 %v247_v9  ;;  %281 = vmatpush3.bf16.msra.mxu1 %v247_v9  ;;  %v180_v41 = vld [vmem:[%s428_s2] ss:$0 sm:$0xff]  ;;  %s291_s2 = scalar_lea.vmem %s170_s26, 512 }
   0xe   :  { %252 = vmatprep.subr.bf16.mxu0 %v251_v14  ;;  %274 = vmatprep.subr.bf16.mxu1 %v251_v14  ;;  %p292_p0 = scmp.ne.s32.totalorder %s170_s26, %s291_s2  ;;  %p297_p2 = scmp.lt.s32.totalorder %s291_s2, %s291_s2 }
  0x10   :  { %p298_p3 = por %p297_p2, %p296_p1 }
  0x11   :  { %254 = vmatpush3.bf16.msra.mxu0 %v251_v14  ;;  %282 = vmatpush3.bf16.msra.mxu1 %v251_v14 }
  0x12   :  { %256 = vmatprep.subr.bf16.mxu0 %v255_v17  ;;  %275 = vmatprep.subr.bf16.mxu1 %v255_v17  ;;  %p299_p4 = pnand %p298_p3, %p292_p0 }
  0x15   :  { %258 = vmatpush3.bf16.msra.mxu0 %v255_v17  ;;  %283 = vmatpush3.bf16.msra.mxu1 %v255_v17 }
  0x16   :  { %260 = vmatprep.subr.bf16.mxu0 %v259_v20  ;;  %276 = vmatprep.subr.bf16.mxu1 %v259_v20 }
  0x19   :  { %262 = vmatpush3.bf16.msra.mxu0 %v259_v20  ;;  %284 = vmatpush3.bf16.msra.mxu1 %v259_v20 }
  0x1a   :  { %264 = vmatprep.subr.bf16.mxu0 %v263_v23  ;;  %277 = vmatprep.subr.bf16.mxu1 %v263_v23 }
  0x1d   :  { %266 = vmatpush3.bf16.msra.mxu0 %v263_v23  ;;  %285 = vmatpush3.bf16.msra.mxu1 %v263_v23 }
  0x1e   :  { %268 = vmatprep.subr.bf16.mxu0 %v267_v26  ;;  %278 = vmatprep.subr.bf16.mxu1 %v267_v26 }
  0x21   :  { %270 = vmatpush3.bf16.msra.mxu0 %v267_v26  ;;  %286 = vmatpush3.bf16.msra.mxu1 %v267_v26 }
  0x24   :  { %234 = vmatmul.mubr.f32.vlgmr.msra.gmra.mrb[0].mxu0 %v29_v27  ;;  %237 = vmatmul.mubr.f32.vlgmr.msra.gmra.mrb[0].mxu1 %v31_v28 }
  0xf7   :  { %v235_v33 = vpop.f32.mrb[0].mxu0  ;;  %v238_v34 = vpop.f32.mrb[0].mxu1 }
  0xf8   :  { %v134_v35 = vadd.f32 %v235_v33, %v25_v29  ;;  %v136_v36 = vadd.f32 %v238_v34, %v27_v30  ;;  %v114_v37 = vpop.f32.mrb[1].mxu0  ;;  %v124_v38 = vpop.f32.mrb[1].mxu1 }
  0xf9   :  { %v133_v39 = vadd.f32 %v114_v37, %v24_v31  ;;  %v135_v40 = vadd.f32 %v124_v38, %v26_v32 }
  0xfa   :  { %139 = vst.msk [vmem:[#allocation2 + $0x8] sm:$0xff] %vm19_vm0, %v134_v35  ;;  %141 = vst.msk [vmem:[#allocation2 + $0x18] sm:$0xff] %vm19_vm0, %v136_v36 }
  0xfb   :  { %138 = vst.msk [vmem:[#allocation2] sm:$0xff] %vm19_vm0, %v133_v39  ;;  %140 = vst.msk [vmem:[#allocation2 + $0x10] sm:$0xff] %vm19_vm0, %v135_v40 }
 0x101   :  { %v146_v42 = vld [vmem:[#allocation2 + $0x8] sm:$0xff]  ;;  %v148_v43 = vld [vmem:[#allocation2 + $0x18] sm:$0xff] }
 0x102   :  { %v145_v44 = vld [vmem:[#allocation2] sm:$0xff]  ;;  %v147_v45 = vld [vmem:[#allocation2 + $0x10] sm:$0xff]  ;;  %v157_v46 = vadd.f32 %v180_v41, %v146_v42  ;;  %v159_v47 = vadd.f32 %v180_v41, %v148_v43 }
 0x103   :  { %v156_v48 = vadd.f32 %v180_v41, %v145_v44  ;;  %v158_v49 = vadd.f32 %v180_v41, %v147_v45 }
 0x104   :  { %161 = vst.msk [vmem:[#allocation3 + $0x8] sm:$0xff] %vm19_vm0, %v157_v46  ;;  %163 = vst.msk [vmem:[#allocation3 + $0x18] sm:$0xff] %vm19_vm0, %v159_v47 }
 0x105   :  { %160 = vst.msk [vmem:[#allocation3] sm:$0xff] %vm19_vm0, %v156_v48  ;;  %162 = vst.msk [vmem:[#allocation3 + $0x10] sm:$0xff] %vm19_vm0, %v158_v49 }
 0x106   :  { %302 = shalt.err (!%p299_p4)
}
 0x107   :  { %s303_s29 = scalar_lea.hbm %s429_s3, 512 }
 0x108   :  { %p304_p5 = scmp.ne.s32.totalorder %s429_s3, %s303_s29  ;;  %p307_p6 = scmp.lt.u32.totalorder %s303_s29, %s429_s3 }
 0x10a   :  { %p309_p7 = pnand %p307_p6, %p304_p5 }
 0x10c   :  { %312 = shalt.err (!%p309_p7)
}
 0x10d   :  { %s317_s7 = smov 128   ;;  %s318_s8 = smov 8  }
 0x10e   :  { %175 = dma.vmem_to_hbm [thread:$0]  %s170_s26, 512, %s429_s3, [#allocation4], %s317_s7, %s317_s7, %s318_s8  }
 0x10f   :  { %313 = dma.done.wait [#allocation4], 512  }
 0x110   :  { %314 = vsyncadd [#allocation4], 4294966784 }
 0x111   :  { %179 = vsyncpa [#allocation4], 1 }

</bundles_post_ra>
